<compile_context>
chip_gen: v7x
topology: tpu7x:2x2x1
jax: 0.10.0
libtpu: 0.0.40
codegen_flags: <defaults>
</compile_context>

<pallas_src>
import functools

import jax
import jax.numpy as jnp
from jax.experimental import pallas as pl
from jax.experimental.pallas import tpu as pltpu


# ----------------------------------------------------------------------------- helpers
def _round_up(x, m):
    return ((x + m - 1) // m) * m


def _nbytes(a):
    return int(a.size) * a.dtype.itemsize


def _vmem_budget_bytes(headroom_bytes=12 * 1024 * 1024):
    """Physical VMEM capacity minus headroom (v5e/v6e: 128 MiB, v7x: 64 MiB per TC)."""
    cap = None
    try:
        info = pltpu.get_tpu_info()
        cap = getattr(info, "vmem_capacity_bytes", None)
    except Exception:
        cap = None
    if not cap:
        cap = 64 * 1024 * 1024  # conservative default = v7x per-TensorCore capacity
    return max(int(cap) - headroom_bytes, 8 * 1024 * 1024)


def _mm(a, w):
    """MXU matmul with f32 accumulation; casts the activation down when the packed
    weights were quantized (bf16 option for v6e/v7x scaled widths)."""
    if w.dtype != a.dtype:
        a = a.astype(w.dtype)
    return jnp.dot(a, w, preferred_element_type=jnp.float32)


# ----------------------------------------------------------------------------- kernels
def _mcn_resident_kernel(*refs, n_hidden_layers):
    """All parameters VMEM-resident; whole per-batch-block MLP in one grid step."""
    if n_hidden_layers > 0:
        x_ref, w0_ref, b0_ref, wh_ref, bh_ref, wl_ref, bl_ref, o_ref = refs
    else:
        x_ref, w0_ref, b0_ref, wl_ref, bl_ref, o_ref = refs
        wh_ref = bh_ref = None

    # input layer + ReLU : (bt, Dp) @ (Dp, C*H)
    h = jnp.maximum(_mm(x_ref[...], w0_ref[...]) + b0_ref[...], 0.0)

    # hidden layers + ReLU (static unroll; block-diagonal (C*H, C*H) weights)
    for layer in range(n_hidden_layers):
        h = jnp.maximum(_mm(h, wh_ref[layer]) + bh_ref[layer], 0.0)

    # output layer + ReLU (the PyTorch module applies relu after EVERY layer).
    out = jnp.maximum(_mm(h, wl_ref[...]) + bl_ref[...], 0.0)

    # Lane-dense store: last dim is a multiple of 128 (zero-padded wl/bl columns).
    o_ref[...] = out.astype(o_ref.dtype)


def _mcn_streaming_kernel(x_ref, w0_ref, b0_ref, wh_ref, bh_ref, wl_ref, bl_ref,
                          o_ref, h_ref):
    """Grid = (batch_blocks['parallel'], hidden_layers['arbitrary']).
    One hidden-layer weight streams HBM->VMEM per step; activation persists in h_ref."""
    l = pl.program_id(1)

    @pl.when(l == 0)
    def _():  # input layer
        h0 = _mm(x_ref[...], w0_ref[...])
        h_ref[...] = jnp.maximum(h0 + b0_ref[...], 0.0)

    # hidden layer l (wh_ref block is (1, C*H, C*H))
    h = _mm(h_ref[...], wh_ref[0])
    h_ref[...] = jnp.maximum(h + bh_ref[0], 0.0)

    @pl.when(l == pl.num_programs(1) - 1)
    def _():  # output layer, written once per batch block (lane-dense)
        out = _mm(h_ref[...], wl_ref[...])
        o_ref[...] = jnp.maximum(out + bl_ref[...], 0.0).astype(o_ref.dtype)


# ----------------------------------------------------------------------------- packing
def pack_params(params, *, n_channels, mxu_dtype=None):
    """One-time host-side repack of per-channel weights into concatenated /
    block-diagonal matrices, padded for layout hygiene:
      w0 : (Dp, C*H)            Dp = round_up(D_in, 8)      (shared input, column concat)
      wh : (L, C*H, C*H)        block-diagonal
      wl : (C*H, COp)           COp = round_up(C*O, 128)    (zero-padded -> lane-dense)
    """
    C = n_channels
    w0, b0 = params["w0"], params["b0"]      # (C, D, H), (C, 1, H)
    wh, bh = params["wh"], params["bh"]      # (C, L, H, H), (C, L, 1, H)
    wl, bl = params["wl"], params["bl"]      # (C, H, O), (C, 1, O)
    D, H = w0.shape[1], w0.shape[2]
    O = wl.shape[-1]
    L = wh.shape[1]
    Dp = _round_up(D, 8)                     # sublane-align the shared contraction dim
    COp = _round_up(C * O, 128)              # lane-dense output width
    eye = jnp.eye(C, dtype=w0.dtype)
    wdt = mxu_dtype if mxu_dtype is not None else w0.dtype

    w0p = jnp.pad(jnp.transpose(w0, (1, 0, 2)).reshape(D, C * H), ((0, Dp - D), (0, 0)))
    wlp = jnp.pad(jnp.einsum("cho,cd->chdo", wl, eye).reshape(C * H, C * O),
                  ((0, 0), (0, COp - C * O)))
    blp = jnp.pad(bl.reshape(1, C * O), ((0, 0), (0, COp - C * O)))

    packed = {
        "w0": w0p.astype(wdt),               # (Dp, C*H)
        "b0": b0.reshape(1, C * H),          # (1, C*H)      (bias stays f32)
        "wl": wlp.astype(wdt),               # (C*H, COp)
        "bl": blp,                           # (1, COp)
    }
    if L > 0:  # skip entirely when there are no hidden layers (no useless DMA)
        packed["wh"] = jnp.einsum("clhk,cd->lchdk", wh, eye).reshape(
            L, C * H, C * H).astype(wdt)                        # (L, C*H, C*H)
        packed["bh"] = jnp.transpose(bh, (1, 0, 2, 3)).reshape(L, 1, C * H)
    return packed


# ----------------------------------------------------------------------------- wrapper
def multi_channel_net_forward(state, packed, *, n_channels, output_size,
                              n_hidden_layers, output_dim=None,
                              batch_block=512, force_streaming=False):
    """Pallas implementation of MultiChannelNet.forward.

    state : (batch, input_size) float32
    packed: dict from pack_params (concatenated / block-diagonal, padded weights)
    """
    B, D = state.shape
    C, O = n_channels, output_size
    L = n_hidden_layers
    has_hidden = L > 0

    w0, b0 = packed["w0"], packed["b0"]
    wl, bl = packed["wl"], packed["bl"]
    Dp, CH = w0.shape
    COp = wl.shape[1]
    CO = C * O

    # Batch tiling: pad to a multiple of 8 sublanes; block the batch for larger B.
    bt = min(_round_up(batch_block, 8), _round_up(max(B, 1), 8))
    Bp = _round_up(max(B, 1), bt)
    nb = Bp // bt
    x = state
    if (Bp, Dp) != (B, D):
        x = jnp.pad(state, ((0, Bp - B), (0, Dp - D)))

    # VMEM budgeting (generation-aware) and resident-vs-streaming decision.
    budget = _vmem_budget_bytes()
    itemsz = state.dtype.itemsize
    xo_block_bytes = bt * Dp * itemsz + bt * COp * itemsz
    base_param_bytes = _nbytes(w0) + _nbytes(b0) + _nbytes(wl) + _nbytes(bl)
    if has_hidden:
        wh, bh = packed["wh"], packed["bh"]
        hidden_bytes = _nbytes(wh) + _nbytes(bh)
        per_layer_bytes = hidden_bytes // L
    else:
        hidden_bytes = per_layer_bytes = 0
    margin = 4 * 1024 * 1024
    resident_need = 2 * (base_param_bytes + hidden_bytes + xo_block_bytes) + margin
    use_streaming = has_hidden and (force_streaming or resident_need > budget)

    out_shape = jax.ShapeDtypeStruct((Bp, COp), state.dtype)

    if not use_streaming:
        args = [x, w0, b0] + ([wh, bh] if has_hidden else []) + [wl, bl]
        in_specs = [pl.BlockSpec((bt, Dp), lambda b: (b, 0)),
                    pl.BlockSpec((Dp, CH), lambda b: (0, 0)),
                    pl.BlockSpec((1, CH), lambda b: (0, 0))]
        if has_hidden:
            in_specs += [pl.BlockSpec((L, CH, CH), lambda b: (0, 0, 0)),
                         pl.BlockSpec((L, 1, CH), lambda b: (0, 0, 0))]
        in_specs += [pl.BlockSpec((CH, COp), lambda b: (0, 0)),
                     pl.BlockSpec((1, COp), lambda b: (0, 0))]
        grid_spec = pltpu.PrefetchScalarGridSpec(
            num_scalar_prefetch=0, grid=(nb,),
            in_specs=in_specs,
            out_specs=pl.BlockSpec((bt, COp), lambda b: (b, 0)))
        out_flat = pl.pallas_call(
            functools.partial(_mcn_resident_kernel, n_hidden_layers=L),
            out_shape=out_shape,
            grid_spec=grid_spec,
            compiler_params=pltpu.CompilerParams(
                dimension_semantics=("parallel",),
                vmem_limit_bytes=int(min(budget, resident_need))),
        )(*args)
    else:
        stream_need = (2 * (base_param_bytes + per_layer_bytes + xo_block_bytes)
                       + bt * CH * 4 + margin)
        grid_spec = pltpu.PrefetchScalarGridSpec(
            num_scalar_prefetch=0, grid=(nb, L),
            in_specs=[pl.BlockSpec((bt, Dp), lambda b, l: (b, 0)),
                      pl.BlockSpec((Dp, CH), lambda b, l: (0, 0)),
                      pl.BlockSpec((1, CH), lambda b, l: (0, 0)),
                      pl.BlockSpec((1, CH, CH), lambda b, l: (l, 0, 0)),   # streamed
                      pl.BlockSpec((1, 1, CH), lambda b, l: (l, 0, 0)),    # streamed
                      pl.BlockSpec((CH, COp), lambda b, l: (0, 0)),
                      pl.BlockSpec((1, COp), lambda b, l: (0, 0))],
            out_specs=pl.BlockSpec((bt, COp), lambda b, l: (b, 0)),
            scratch_shapes=[pltpu.VMEM((bt, CH), jnp.float32)])  # persistent activation
        out_flat = pl.pallas_call(
            _mcn_streaming_kernel,
            out_shape=out_shape,
            grid_spec=grid_spec,
            compiler_params=pltpu.CompilerParams(
                dimension_semantics=("parallel", "arbitrary"),
                vmem_limit_bytes=int(min(budget, max(stream_need, margin)))),
        )(x, w0, b0, wh, bh, wl, bl)

    # Slice off batch/lane padding; channel axis was concatenated along lanes.
    out = out_flat[:B, :CO]
    output = out if C == 1 else out.reshape(B, C, O)

    # Faithful to the PyTorch module: reshape the trailing axis to output_dim when
    # it differs from the default (n_channels, output_size).
    default_output_dim = (C, O)
    if output_dim is not None and tuple(output_dim) != default_output_dim:
        output = output.reshape(tuple(output.shape[:-1]) + tuple(output_dim))
    return output


# ----------------------------------------------------------------------------- test rig
def init_params(key, *, n_channels, input_size, hidden, n_hidden_layers,
                output_size, dtype=jnp.float32):
    """Deterministic synthetic parameters (per-channel, pre-transposed Linear stacks)."""
    ks = jax.random.split(key, 6)
    L = n_hidden_layers

    def scaled_normal(k, shape, fan_in):
        return (jax.random.normal(k, shape, dtype) / jnp.sqrt(fan_in)).astype(dtype)

    return {
        "w0": scaled_normal(ks[0], (n_channels, input_size, hidden), input_size),
        "b0": scaled_normal(ks[1], (n_channels, 1, hidden), input_size),
        "wh": scaled_normal(ks[2], (n_channels, L, hidden, hidden), hidden),
        "bh": scaled_normal(ks[3], (n_channels, L, 1, hidden), hidden),
        "wl": scaled_normal(ks[4], (n_channels, hidden, output_size), hidden),
        "bl": scaled_normal(ks[5], (n_channels, 1, output_size), hidden),
    }


def reference_forward(state, params, *, n_channels, n_hidden_layers):
    """Pure-JAX reference mirroring the PyTorch per-channel loop."""
    outs = []
    for c in range(n_channels):
        x = state
        x = jnp.maximum(x @ params["w0"][c] + params["b0"][c], 0.0)
        for l in range(n_hidden_layers):
            x = jnp.maximum(x @ params["wh"][c, l] + params["bh"][c, l], 0.0)
        x = jnp.maximum(x @ params["wl"][c] + params["bl"][c], 0.0)
        outs.append(x)
    return outs[0] if n_channels == 1 else jnp.stack(outs, axis=1)


def _run_case(key, *, batch, n_channels, input_size, hidden, n_hidden_layers,
              output_size, **fwd_kwargs):
    k_state, k_params = jax.random.split(key)
    state = jax.random.normal(k_state, (batch, input_size), jnp.float32)
    params = init_params(k_params, n_channels=n_channels, input_size=input_size,
                         hidden=hidden, n_hidden_layers=n_hidden_layers,
                         output_size=output_size)
    packed = pack_params(params, n_channels=n_channels)

    out = multi_channel_net_forward(state, packed, n_channels=n_channels,
                                    output_size=output_size,
                                    n_hidden_layers=n_hidden_layers, **fwd_kwargs)
    out = jax.block_until_ready(out)

    ref = reference_forward(state, params, n_channels=n_channels,
                            n_hidden_layers=n_hidden_layers)
    expected_shape = ((batch, output_size) if n_channels == 1
                      else (batch, n_channels, output_size))
    assert out.shape == expected_shape, (out.shape, expected_shape)
    assert jnp.allclose(out, ref, atol=1e-4, rtol=1e-4), "mismatch vs reference"


if __name__ == "__main__":
    key = jax.random.PRNGKey(0)
    k1, k2, k3, k4 = jax.random.split(key, 4)

    # Resident path: batch=2, channels=4, hidden=32 (C*H = 128 = one MXU tile).
    _run_case(k1, batch=2, n_channels=4, input_size=10, hidden=32,
              n_hidden_layers=2, output_size=10)
    # n_channels == 1 path (output squeezes the channel axis, like the module).
    _run_case(k2, batch=2, n_channels=1, input_size=10, hidden=32,
              n_hidden_layers=2, output_size=10)
    # No hidden layers: wh/bh are skipped entirely (no useless DMA / VMEM residency).
    _run_case(k3, batch=2, n_channels=2, input_size=10, hidden=32,
              n_hidden_layers=0, output_size=10)
    # Streaming path + batch grid ("parallel" x "arbitrary"): forced at small shapes
    # to validate the scaled-config fallback (one hidden-layer weight per grid step).
    _run_case(k4, batch=16, n_channels=4, input_size=10, hidden=32,
              n_hidden_layers=3, output_size=10,
              force_streaming=True, batch_block=8)

    print("KERNEL_OK")
</pallas_src>

<mosaic_0001>
module attributes {stable_mosaic.version = 11 : i64} {
  func.func @_mcn_resident_kernel(%arg0: i32, %arg1: memref<8x16xf32, #tpu.memory_space<vmem>>, %arg2: memref<16x128xf32, #tpu.memory_space<vmem>>, %arg3: memref<1x128xf32, #tpu.memory_space<vmem>>, %arg4: memref<2x128x128xf32, #tpu.memory_space<vmem>>, %arg5: memref<2x1x128xf32, #tpu.memory_space<vmem>>, %arg6: memref<128x128xf32, #tpu.memory_space<vmem>>, %arg7: memref<1x128xf32, #tpu.memory_space<vmem>>, %arg8: memref<8x128xf32, #tpu.memory_space<vmem>>) attributes {dimension_semantics = [#tpu.dimension_semantics<parallel>], iteration_bounds = array<i64: 1>, scalar_prefetch = 0 : i64, scratch_operands = 0 : i64, tpu.core_type = #tpu.core_type<tc>, window_params = [{transform_indices = @transform_0, window_bounds = array<i64: 8, 16>}, {pipeline_mode = #tpu.pipeline_mode<synchronous>, transform_indices = @transform_1, window_bounds = array<i64: 16, 128>}, {pipeline_mode = #tpu.pipeline_mode<synchronous>, transform_indices = @transform_2, window_bounds = array<i64: 1, 128>}, {pipeline_mode = #tpu.pipeline_mode<synchronous>, transform_indices = @transform_3, window_bounds = array<i64: 2, 128, 128>}, {pipeline_mode = #tpu.pipeline_mode<synchronous>, transform_indices = @transform_4, window_bounds = array<i64: 2, 1, 128>}, {pipeline_mode = #tpu.pipeline_mode<synchronous>, transform_indices = @transform_5, window_bounds = array<i64: 128, 128>}, {pipeline_mode = #tpu.pipeline_mode<synchronous>, transform_indices = @transform_6, window_bounds = array<i64: 1, 128>}, {transform_indices = @transform_7, window_bounds = array<i64: 8, 128>}]} {
    %c0 = arith.constant 0 : index
    %c0_0 = arith.constant 0 : index
    %0 = vector.load %arg1[%c0, %c0_0] : memref<8x16xf32, #tpu.memory_space<vmem>>, vector<8x16xf32>
    %c0_1 = arith.constant 0 : index
    %c0_2 = arith.constant 0 : index
    %1 = vector.load %arg2[%c0_1, %c0_2] : memref<16x128xf32, #tpu.memory_space<vmem>>, vector<16x128xf32>
    %cst = arith.constant dense<0.000000e+00> : vector<8x128xf32>
    %2 = tpu.matmul %0, %1, %cst {dimension_numbers = #tpu.dot_dimension_numbers<[1], [0], [0], [1], [0, 0, 1, 1], [], []>} : vector<8x16xf32>, vector<16x128xf32>, vector<8x128xf32> -> vector<8x128xf32>
    %c0_3 = arith.constant 0 : index
    %c0_4 = arith.constant 0 : index
    %3 = vector.load %arg3[%c0_3, %c0_4] : memref<1x128xf32, #tpu.memory_space<vmem>>, vector<1x128xf32>
    %4 = vector.broadcast %3 : vector<1x128xf32> to vector<8x128xf32>
    %5 = arith.addf %2, %4 : vector<8x128xf32>
    %cst_5 = arith.constant 0.000000e+00 : f32
    %6 = vector.broadcast %cst_5 : f32 to vector<8x128xf32>
    %7 = arith.maximumf %5, %6 : vector<8x128xf32>
    %c0_6 = arith.constant 0 : index
    %c0_7 = arith.constant 0 : index
    %c0_8 = arith.constant 0 : index
    %8 = vector.load %arg4[%c0_6, %c0_7, %c0_8] : memref<2x128x128xf32, #tpu.memory_space<vmem>>, vector<1x128x128xf32>
    %9 = vector.shape_cast %8 : vector<1x128x128xf32> to vector<128x128xf32>
    %cst_9 = arith.constant dense<0.000000e+00> : vector<8x128xf32>
    %10 = tpu.matmul %7, %9, %cst_9 {dimension_numbers = #tpu.dot_dimension_numbers<[1], [0], [0], [1], [0, 0, 1, 1], [], []>} : vector<8x128xf32>, vector<128x128xf32>, vector<8x128xf32> -> vector<8x128xf32>
    %c0_10 = arith.constant 0 : index
    %c0_11 = arith.constant 0 : index
    %c0_12 = arith.constant 0 : index
    %11 = vector.load %arg5[%c0_10, %c0_11, %c0_12] : memref<2x1x128xf32, #tpu.memory_space<vmem>>, vector<1x1x128xf32>
    %12 = vector.shape_cast %11 : vector<1x1x128xf32> to vector<1x128xf32>
    %13 = vector.broadcast %12 : vector<1x128xf32> to vector<8x128xf32>
    %14 = arith.addf %10, %13 : vector<8x128xf32>
    %cst_13 = arith.constant 0.000000e+00 : f32
    %15 = vector.broadcast %cst_13 : f32 to vector<8x128xf32>
    %16 = arith.maximumf %14, %15 : vector<8x128xf32>
    %c1 = arith.constant 1 : index
    %c0_14 = arith.constant 0 : index
    %c0_15 = arith.constant 0 : index
    %17 = vector.load %arg4[%c1, %c0_14, %c0_15] : memref<2x128x128xf32, #tpu.memory_space<vmem>>, vector<1x128x128xf32>
    %18 = vector.shape_cast %17 : vector<1x128x128xf32> to vector<128x128xf32>
    %cst_16 = arith.constant dense<0.000000e+00> : vector<8x128xf32>
    %19 = tpu.matmul %16, %18, %cst_16 {dimension_numbers = #tpu.dot_dimension_numbers<[1], [0], [0], [1], [0, 0, 1, 1], [], []>} : vector<8x128xf32>, vector<128x128xf32>, vector<8x128xf32> -> vector<8x128xf32>
    %c1_17 = arith.constant 1 : index
    %c0_18 = arith.constant 0 : index
    %c0_19 = arith.constant 0 : index
    %20 = vector.load %arg5[%c1_17, %c0_18, %c0_19] : memref<2x1x128xf32, #tpu.memory_space<vmem>>, vector<1x1x128xf32>
    %21 = vector.shape_cast %20 : vector<1x1x128xf32> to vector<1x128xf32>
    %22 = vector.broadcast %21 : vector<1x128xf32> to vector<8x128xf32>
    %23 = arith.addf %19, %22 : vector<8x128xf32>
    %cst_20 = arith.constant 0.000000e+00 : f32
    %24 = vector.broadcast %cst_20 : f32 to vector<8x128xf32>
    %25 = arith.maximumf %23, %24 : vector<8x128xf32>
    %c0_21 = arith.constant 0 : index
    %c0_22 = arith.constant 0 : index
    %26 = vector.load %arg6[%c0_21, %c0_22] : memref<128x128xf32, #tpu.memory_space<vmem>>, vector<128x128xf32>
    %cst_23 = arith.constant dense<0.000000e+00> : vector<8x128xf32>
    %27 = tpu.matmul %25, %26, %cst_23 {dimension_numbers = #tpu.dot_dimension_numbers<[1], [0], [0], [1], [0, 0, 1, 1], [], []>} : vector<8x128xf32>, vector<128x128xf32>, vector<8x128xf32> -> vector<8x128xf32>
    %c0_24 = arith.constant 0 : index
    %c0_25 = arith.constant 0 : index
    %28 = vector.load %arg7[%c0_24, %c0_25] : memref<1x128xf32, #tpu.memory_space<vmem>>, vector<1x128xf32>
    %29 = vector.broadcast %28 : vector<1x128xf32> to vector<8x128xf32>
    %30 = arith.addf %27, %29 : vector<8x128xf32>
    %cst_26 = arith.constant 0.000000e+00 : f32
    %31 = vector.broadcast %cst_26 : f32 to vector<8x128xf32>
    %32 = arith.maximumf %30, %31 : vector<8x128xf32>
    %c0_27 = arith.constant 0 : index
    %c0_28 = arith.constant 0 : index
    %33 = vector.load %arg8[%c0_27, %c0_28] : memref<8x128xf32, #tpu.memory_space<vmem>>, vector<8x128xf32>
    tpu.vector_store %arg8[%c0_27, %c0_28], %32 {strides = array<i32>} : memref<8x128xf32, #tpu.memory_space<vmem>>, vector<8x128xf32>,
    return
  }
  func.func @transform_0(%arg0: i32) -> (i32, i32) {
    %c0_i32 = arith.constant 0 : i32
    %c0_i32_0 = arith.constant 0 : i32
    return %arg0, %c0_i32 : i32, i32
  }
  func.func @transform_1(%arg0: i32) -> (i32, i32) {
    %c0_i32 = arith.constant 0 : i32
    %c0_i32_0 = arith.constant 0 : i32
    %c0_i32_1 = arith.constant 0 : i32
    return %c0_i32, %c0_i32_0 : i32, i32
  }
  func.func @transform_2(%arg0: i32) -> (i32, i32) {
    %c0_i32 = arith.constant 0 : i32
    %c0_i32_0 = arith.constant 0 : i32
    %c0_i32_1 = arith.constant 0 : i32
    return %c0_i32, %c0_i32_0 : i32, i32
  }
  func.func @transform_3(%arg0: i32) -> (i32, i32, i32) {
    %c0_i32 = arith.constant 0 : i32
    %c0_i32_0 = arith.constant 0 : i32
    %c0_i32_1 = arith.constant 0 : i32
    %c0_i32_2 = arith.constant 0 : i32
    return %c0_i32, %c0_i32_0, %c0_i32_1 : i32, i32, i32
  }
  func.func @transform_4(%arg0: i32) -> (i32, i32, i32) {
    %c0_i32 = arith.constant 0 : i32
    %c0_i32_0 = arith.constant 0 : i32
    %c0_i32_1 = arith.constant 0 : i32
    %c0_i32_2 = arith.constant 0 : i32
    return %c0_i32, %c0_i32_0, %c0_i32_1 : i32, i32, i32
  }
  func.func @transform_5(%arg0: i32) -> (i32, i32) {
    %c0_i32 = arith.constant 0 : i32
    %c0_i32_0 = arith.constant 0 : i32
    %c0_i32_1 = arith.constant 0 : i32
    return %c0_i32, %c0_i32_0 : i32, i32
  }
  func.func @transform_6(%arg0: i32) -> (i32, i32) {
    %c0_i32 = arith.constant 0 : i32
    %c0_i32_0 = arith.constant 0 : i32
    %c0_i32_1 = arith.constant 0 : i32
    return %c0_i32, %c0_i32_0 : i32, i32
  }
  func.func @transform_7(%arg0: i32) -> (i32, i32) {
    %c0_i32 = arith.constant 0 : i32
    %c0_i32_0 = arith.constant 0 : i32
    return %arg0, %c0_i32 : i32, i32
  }
}

</mosaic_0001>

<bundles_post_ra>
// kernel: tpu_custom_call.1
= control target key start
LH: loop header
LB: loop body
LE: loop exit
PB: predicated region body
PF: predicated region fallthrough
CT: control target
= control target key end

     0   :  { %12 = vsyncpa [#allocation3], 0  ;;  %s1006_s0 = inlined_call_operand.hbm [shape: f32[8,16], index: 0, kind: input, shape index: {}]   ;;  %s1007_s1 = inlined_call_operand.hbm [shape: f32[16,128], index: 1, kind: input, shape index: {}]   ;;  %s1008_s2 = inlined_call_operand.vmem [shape: f32[1,128], index: 2, kind: input, shape index: {}]   ;;  %s1009_s3 = inlined_call_operand.hbm [shape: f32[2,128,128], index: 3, kind: input, shape index: {}]   ;;  %s1010_s4 = inlined_call_operand.vmem [shape: f32[2,1,128], index: 4, kind: input, shape index: {}]   ;;  %s1011_s5 = inlined_call_operand.hbm [shape: f32[128,128], index: 5, kind: input, shape index: {}]   ;;  %s1012_s6 = inlined_call_operand.vmem [shape: f32[1,128], index: 6, kind: input, shape index: {}]   ;;  %s1013_s7 = inlined_call_operand.hbm [shape: f32[8,128], index: 7, kind: output, shape index: {}]  }
   0x1   :  { %13 = vsyncpa [#allocation6], 0 }
   0x2   :  { %14 = vsyncpa [#allocation9], 0 }
   0x3   :  { %15 = vsyncpa [#allocation4], 0  ;;  %s842_s24 = smov [#allocation5]   ;;  %s724_s28 = scalar_lea.hbm %s1007_s1, 256 }
   0x4   :  { %s31_s25 = sshll.u32 %s842_s24, 4  ;;  %p725_p0 = scmp.ne.s32.totalorder %s1007_s1, %s724_s28  ;;  %s32_s25 = int_to_ptr.vmem [resolvable:$true] %s31_s25 }
   0x5   :  { %p728_p1 = scmp.lt.u32.totalorder %s724_s28, %s1007_s1 }
   0x7   :  { %p730_p2 = pnand %p728_p1, %p725_p0 }
   0x9   :  { %733 = shalt.err (!%p730_p2)
}
   0xa   :  { %s734_s10 = scalar_lea.vmem %s32_s25, 256  ;;  %p739_p4 = scmp.lt.s32.totalorder %s32_s25, %s32_s25 }
   0xb   :  { %p735_p3 = scmp.ne.s32.totalorder %s32_s25, %s734_s10  ;;  %p740_p5 = scmp.lt.s32.totalorder %s734_s10, %s734_s10 }
   0xd   :  { %p741_p6 = por %p740_p5, %p739_p4 }
   0xf   :  { %p742_p7 = pnand %p741_p6, %p735_p3 }
  0x11   :  { %745 = shalt.err (!%p742_p7)
}
  0x12   :  { %s843_s11 = smov 128   ;;  %s844_s12 = smov 8  }
  0x13   :  { %37 = dma.hbm_to_vmem [thread:$0]  %s1007_s1, 256, %s32_s25, [#allocation6], %s843_s11, %s843_s11, %s844_s12  }
  0x14   :  { %s845_s15 = smov [#allocation2]   ;;  %s846_s17 = smov [#allocation7]  }
  0x15   :  { %s22_s16 = sshll.u32 %s845_s15, 4  ;;  %s45_s18 = sshll.u32 %s846_s17, 4  ;;  %s23_s16 = int_to_ptr.vmem [resolvable:$true] %s22_s16  ;;  %s46_s18 = int_to_ptr.vmem [resolvable:$true] %s45_s18 }
  0x16   :  { %s746_s21 = scalar_lea.hbm %s1006_s0, 128 }
  0x17   :  { %p747_p8 = scmp.ne.s32.totalorder %s1006_s0, %s746_s21  ;;  %p750_p9 = scmp.lt.u32.totalorder %s746_s21, %s1006_s0 }
  0x19   :  { %p752_p10 = pnand %p750_p9, %p747_p8 }
  0x1b   :  { %755 = shalt.err (!%p752_p10)
}
  0x1c   :  { %s756_s1 = scalar_lea.vmem %s23_s16, 128  ;;  %p761_p12 = scmp.lt.s32.totalorder %s23_s16, %s23_s16 }
  0x1d   :  { %p757_p11 = scmp.ne.s32.totalorder %s23_s16, %s756_s1  ;;  %p762_p13 = scmp.lt.s32.totalorder %s756_s1, %s756_s1 }
  0x1f   :  { %p763_p0 = por %p762_p13, %p761_p12 }
  0x21   :  { %p764_p1 = pnand %p763_p0, %p757_p11 }
  0x23   :  { %767 = shalt.err (!%p764_p1)
}
  0x24   :  { %25 = dma.hbm_to_vmem [thread:$0]  %s1006_s0, 128, %s23_s16, [#allocation3]  }
  0x25   :  { %s768_s30 = scalar_lea.hbm %s1009_s3, 4096 }
  0x26   :  { %p769_p2 = scmp.ne.s32.totalorder %s1009_s3, %s768_s30  ;;  %p772_p3 = scmp.lt.u32.totalorder %s768_s30, %s1009_s3 }
  0x28   :  { %p774_p4 = pnand %p772_p3, %p769_p2 }
  0x2a   :  { %777 = shalt.err (!%p774_p4)
}
  0x2b   :  { %s778_s14 = scalar_lea.vmem %s46_s18, 4096  ;;  %p783_p6 = scmp.lt.s32.totalorder %s46_s18, %s46_s18 }
  0x2c   :  { %p779_p5 = scmp.ne.s32.totalorder %s46_s18, %s778_s14  ;;  %p784_p7 = scmp.lt.s32.totalorder %s778_s14, %s778_s14 }
  0x2e   :  { %p785_p8 = por %p784_p7, %p783_p6 }
  0x30   :  { %p786_p9 = pnand %p785_p8, %p779_p5 }
  0x32   :  { %789 = shalt.err (!%p786_p9)
}
  0x33   :  { %51 = dma.hbm_to_vmem [thread:$0]  %s1009_s3, 4096, %s46_s18, [#allocation6], %s843_s11, %s843_s11, %s844_s12  }
  0x34   :  { %s847_s16 = smov [#allocation8]   ;;  %s790_s21 = scalar_lea.hbm %s1011_s5, 2048 }
  0x35   :  { %s59_s17 = sshll.u32 %s847_s16, 4  ;;  %p791_p10 = scmp.ne.s32.totalorder %s1011_s5, %s790_s21  ;;  %s60_s17 = int_to_ptr.vmem [resolvable:$true] %s59_s17 }
  0x36   :  { %p794_p11 = scmp.lt.u32.totalorder %s790_s21, %s1011_s5 }
  0x38   :  { %p796_p12 = pnand %p794_p11, %p791_p10 }
  0x3a   :  { %799 = shalt.err (!%p796_p12)
}
  0x3b   :  { %s800_s1 = scalar_lea.vmem %s60_s17, 2048  ;;  %p805_p0 = scmp.lt.s32.totalorder %s60_s17, %s60_s17 }
  0x3c   :  { %p801_p13 = scmp.ne.s32.totalorder %s60_s17, %s800_s1  ;;  %p806_p1 = scmp.lt.s32.totalorder %s800_s1, %s800_s1 }
  0x3e   :  { %p807_p2 = por %p806_p1, %p805_p0 }
  0x40   :  { %p808_p3 = pnand %p807_p2, %p801_p13 }
  0x42   :  { %811 = shalt.err (!%p808_p3)
}
  0x43   :  { %65 = dma.hbm_to_vmem [thread:$0]  %s1011_s5, 2048, %s60_s17, [#allocation9], %s843_s11, %s843_s11, %s844_s12  }
  0x44   :  { %834 = dma.done.wait [#allocation3], 128  }
  0x45   :  { %835 = vsyncadd [#allocation3], 4294967168 }
  0x46   :  { %836 = dma.done.wait [#allocation6], 4352  }
  0x47   :  { %837 = vsyncadd [#allocation6], 4294962944 }
  0x48   :  { %838 = dma.done.wait [#allocation9], 2048  }
  0x49   :  { %839 = vsyncadd [#allocation9], 4294965248  ;;  %v848_v0 = vmov 0.0|0.0   ;;  %vm849_vm0 = vmmov 0   ;;  %v850_v1 = vmov 0.0   ;;  %v81_v2 = vld [vmem:[#allocation5] sm:$0xff] }
  0x4a   :  { %639 = vmatprep.subr.bf16.mxu0 %v848_v0  ;;  %531 = vmatprep.mubr.msk.f32.mxu0 %vm849_vm0, %v850_v1  ;;  %v82_v3 = vld [vmem:[#allocation5 + $0x8] sm:$0xff]  ;;  %v165_v5 = vld [vmem:[#allocation7] sm:$0xff]  ;;  %v166_v6 = vld [vmem:[#allocation7 + $0x8] sm:$0xff]  ;;  %vm90_vm1 = vcmask 130048   ;;  %s851_s30 = smov [#allocation10]  }
  0x4b   :  { %642 = vmatprep.subr.bf16.mxu1 %v848_v0  ;;  %566 = vmatprep.mubr.msk.f32.mxu1 %vm849_vm0, %v850_v1  ;;  %v640_v4 = vpack.c.bf16 %v82_v3, %v81_v2  ;;  %v167_v7 = vld [vmem:[#allocation7 + $0x10] sm:$0xff]  ;;  %v643_v8 = vpack.c.bf16 %v166_v6, %v165_v5  ;;  %v168_v9 = vld [vmem:[#allocation7 + $0x18] sm:$0xff]  ;;  %v80_v10 = vld [vmem:[#allocation2] sm:$0xff]  ;;  %s456_s8 = sshll.u32 %s851_s30, 4  ;;  %s457_s8 = int_to_ptr.vmem [resolvable:$true] %s456_s8 }
  0x4c   :  { %v646_v11 = vpack.c.bf16 %v168_v9, %v167_v7  ;;  %v169_v12 = vld [vmem:[#allocation7 + $0x20] sm:$0xff]  ;;  %v170_v13 = vld [vmem:[#allocation7 + $0x28] sm:$0xff]  ;;  %v171_v15 = vld [vmem:[#allocation7 + $0x30] sm:$0xff]  ;;  %s812_s9 = scalar_lea.vmem %s457_s8, 128  ;;  %p817_p5 = scmp.lt.s32.totalorder %s457_s8, %s457_s8 }
  0x4d   :  { %641 = vmatpush3.bf16.msra.mxu0 %v640_v4  ;;  %644 = vmatpush3.bf16.msra.mxu1 %v643_v8  ;;  %v649_v14 = vpack.c.bf16 %v170_v13, %v169_v12  ;;  %v172_v16 = vld [vmem:[#allocation7 + $0x38] sm:$0xff]  ;;  %v173_v18 = vld [vmem:[#allocation7 + $0x40] sm:$0xff]  ;;  %v174_v19 = vld [vmem:[#allocation7 + $0x48] sm:$0xff]  ;;  %p813_p4 = scmp.ne.s32.totalorder %s457_s8, %s812_s9  ;;  %p818_p6 = scmp.lt.s32.totalorder %s812_s9, %s812_s9 }
  0x4e   :  { %666 = vmatprep.subr.bf16.mxu0 %v848_v0  ;;  %645 = vmatprep.subr.bf16.mxu1 %v848_v0  ;;  %v652_v17 = vpack.c.bf16 %v172_v16, %v171_v15  ;;  %v655_v20 = vpack.c.bf16 %v174_v19, %v173_v18  ;;  %v175_v21 = vld [vmem:[#allocation7 + $0x50] sm:$0xff]  ;;  %v176_v22 = vld [vmem:[#allocation7 + $0x58] sm:$0xff]  ;;  %v177_v24 = vld [vmem:[#allocation7 + $0x60] sm:$0xff] }
  0x4f   :  { %v658_v23 = vpack.c.bf16 %v176_v22, %v175_v21  ;;  %v178_v25 = vld [vmem:[#allocation7 + $0x68] sm:$0xff]  ;;  %v179_v27 = vld [vmem:[#allocation7 + $0x70] sm:$0xff]  ;;  %v180_v28 = vld [vmem:[#allocation7 + $0x78] sm:$0xff]  ;;  %p819_p7 = por %p818_p6, %p817_p5 }
  0x50   :  { %532 = vmatmul.mubr.msk.f32.vlgmr.msra.gmra.mrb[0].mxu0 %vm90_vm1, %v80_v10  ;;  %v661_v26 = vpack.c.bf16 %v178_v25, %v177_v24  ;;  %v664_v29 = vpack.c.bf16 %v180_v28, %v179_v27  ;;  %v260_v30 = vld [vmem:[#allocation7 + $0x80] sm:$0xff]  ;;  %v261_v31 = vld [vmem:[#allocation7 + $0x88] sm:$0xff]  ;;  %v262_v32 = vld [vmem:[#allocation7 + $0x90] sm:$0xff] }
  0x51   :  { %601 = vmatprep.mubr.msk.f32.mxu0 %vm849_vm0, %v850_v1  ;;  %647 = vmatpush3.bf16.msra.mxu1 %v646_v11  ;;  %v667_v33 = vpack.c.bf16 %v261_v31, %v260_v30  ;;  %v263_v34 = vld [vmem:[#allocation7 + $0x98] sm:$0xff]  ;;  %v264_v36 = vld [vmem:[#allocation7 + $0xa0] sm:$0xff]  ;;  %v265_v37 = vld [vmem:[#allocation7 + $0xa8] sm:$0xff]  ;;  %p820_p8 = pnand %p819_p7, %p813_p4 }
  0x52   :  { %648 = vmatprep.subr.bf16.mxu1 %v848_v0  ;;  %v670_v35 = vpack.c.bf16 %v263_v34, %v262_v32  ;;  %v673_v38 = vpack.c.bf16 %v265_v37, %v264_v36  ;;  %v266_v39 = vld [vmem:[#allocation7 + $0xb0] sm:$0xff]  ;;  %v267_v40 = vld [vmem:[#allocation7 + $0xb8] sm:$0xff]  ;;  %v268_v42 = vld [vmem:[#allocation7 + $0xc0] sm:$0xff] }
  0x53   :  { %668 = vmatpush3.bf16.msra.mxu0 %v667_v33  ;;  %v676_v41 = vpack.c.bf16 %v267_v40, %v266_v39  ;;  %v269_v43 = vld [vmem:[#allocation7 + $0xc8] sm:$0xff]  ;;  %v270_v45 = vld [vmem:[#allocation7 + $0xd0] sm:$0xff]  ;;  %v271_v46 = vld [vmem:[#allocation7 + $0xd8] sm:$0xff] }
  0x54   :  { %669 = vmatprep.subr.bf16.mxu0 %v848_v0  ;;  %v679_v44 = vpack.c.bf16 %v269_v43, %v268_v42  ;;  %v682_v47 = vpack.c.bf16 %v271_v46, %v270_v45  ;;  %v272_v48 = vld [vmem:[#allocation7 + $0xe0] sm:$0xff]  ;;  %v273_v49 = vld [vmem:[#allocation7 + $0xe8] sm:$0xff]  ;;  %v274_v56 = vld [vmem:[#allocation7 + $0xf0] sm:$0xff] }
  0x55   :  { %650 = vmatpush3.bf16.msra.mxu1 %v649_v14  ;;  %v685_v50 = vpack.c.bf16 %v273_v49, %v272_v48  ;;  %v467_v51 = vld [vmem:[%s1008_s2] ss:$0 sm:$0xff]  ;;  %v275_v57 = vld [vmem:[#allocation7 + $0xf8] sm:$0xff]  ;;  %v355_v59 = vld [vmem:[#allocation8] sm:$0xff] }
  0x56   :  { %651 = vmatprep.subr.bf16.mxu1 %v848_v0  ;;  %v688_v58 = vpack.c.bf16 %v275_v57, %v274_v56  ;;  %v356_v60 = vld [vmem:[#allocation8 + $0x8] sm:$0xff]  ;;  %v357_v61 = vld [vmem:[#allocation8 + $0x10] sm:$0xff]  ;;  %v358_v63 = vld [vmem:[#allocation8 + $0x18] sm:$0xff] }
  0x57   :  { %671 = vmatpush3.bf16.msra.mxu0 %v670_v35  ;;  %v691_v62 = vpack.c.bf16 %v356_v60, %v355_v59  ;;  %v694_v2 = vpack.c.bf16 %v358_v63, %v357_v61  ;;  %v359_v3 = vld [vmem:[#allocation8 + $0x20] sm:$0xff]  ;;  %v360_v4 = vld [vmem:[#allocation8 + $0x28] sm:$0xff]  ;;  %v362_v6 = vld [vmem:[#allocation8 + $0x38] sm:$0xff] }
  0x58   :  { %672 = vmatprep.subr.bf16.mxu0 %v848_v0  ;;  %v697_v5 = vpack.c.bf16 %v360_v4, %v359_v3  ;;  %v363_v8 = vld [vmem:[#allocation8 + $0x40] sm:$0xff]  ;;  %v364_v9 = vld [vmem:[#allocation8 + $0x48] sm:$0xff]  ;;  %v365_v11 = vld [vmem:[#allocation8 + $0x50] sm:$0xff] }
  0x59   :  { %653 = vmatpush3.bf16.msra.mxu1 %v652_v17  ;;  %v703_v10 = vpack.c.bf16 %v364_v9, %v363_v8  ;;  %v366_v12 = vld [vmem:[#allocation8 + $0x58] sm:$0xff]  ;;  %v367_v14 = vld [vmem:[#allocation8 + $0x60] sm:$0xff]  ;;  %v368_v15 = vld [vmem:[#allocation8 + $0x68] sm:$0xff] }
  0x5a   :  { %654 = vmatprep.subr.bf16.mxu1 %v848_v0  ;;  %v706_v13 = vpack.c.bf16 %v366_v12, %v365_v11  ;;  %v709_v16 = vpack.c.bf16 %v368_v15, %v367_v14  ;;  %v469_v17 = vld [vmem:[%s1010_s4] ss:$0 sm:$0xff]  ;;  %v369_v22 = vld [vmem:[#allocation8 + $0x70] sm:$0xff]  ;;  %v471_v25 = vld [vmem:[%s1010_s4 + $0x1] ss:$0 sm:$0xff] }
  0x5b   :  { %674 = vmatpush3.bf16.msra.mxu0 %v673_v38 }
  0x5c   :  { %675 = vmatprep.subr.bf16.mxu0 %v848_v0 }
  0x5d   :  { %656 = vmatpush3.bf16.msra.mxu1 %v655_v20 }
  0x5e   :  { %657 = vmatprep.subr.bf16.mxu1 %v848_v0 }
  0x5f   :  { %677 = vmatpush3.bf16.msra.mxu0 %v676_v41 }
  0x60   :  { %678 = vmatprep.subr.bf16.mxu0 %v848_v0 }
  0x61   :  { %659 = vmatpush3.bf16.msra.mxu1 %v658_v23  ;;  %v370_v23 = vld [vmem:[#allocation8 + $0x78] sm:$0xff] }
  0x62   :  { %660 = vmatprep.subr.bf16.mxu1 %v848_v0  ;;  %v712_v24 = vpack.c.bf16 %v370_v23, %v369_v22 }
  0x63   :  { %680 = vmatpush3.bf16.msra.mxu0 %v679_v44 }
  0x64   :  { %681 = vmatprep.subr.bf16.mxu0 %v848_v0 }
  0x65   :  { %662 = vmatpush3.bf16.msra.mxu1 %v661_v26 }
  0x66   :  { %663 = vmatprep.subr.bf16.mxu1 %v848_v0 }
  0x67   :  { %683 = vmatpush3.bf16.msra.mxu0 %v682_v47 }
  0x68   :  { %684 = vmatprep.subr.bf16.mxu0 %v848_v0 }
  0x69   :  { %665 = vmatpush3.bf16.msra.mxu1 %v664_v29  ;;  %v472_v29 = vld [vmem:[%s1012_s6] ss:$0 sm:$0xff] }
  0x6a   :  { %690 = vmatprep.subr.bf16.mxu1 %v848_v0 }
  0x6b   :  { %686 = vmatpush3.bf16.msra.mxu0 %v685_v50 }
  0x6c   :  { %687 = vmatprep.subr.bf16.mxu0 %v848_v0 }
  0x6f   :  { %689 = vmatpush3.bf16.msra.mxu0 %v688_v58 }
 0x123   :  { %v160_v52 = vpop.f32.mrb[0].mxu0 }
 0x124   :  { %v161_v53 = vadd.f32 %v467_v51, %v160_v52  ;;  %v533_v54 = vpop.f32.mrb[1].mxu0 }
 0x126   :  { %v164_v55 = vmax.f32 %v161_v53, 0.0 }
 0x128   :  { %567 = vmatmul.mubr.f32.vlgmr.msra.gmra.mrb[0].mxu1 %v164_v55 }
 0x129   :  { %636 = vmatprep.mubr.msk.f32.mxu1 %vm849_vm0, %v850_v1  ;;  %692 = vmatpush3.bf16.msra.mxu1 %v691_v62  ;;  %v361_v1 = vld [vmem:[#allocation8 + $0x30] sm:$0xff] }
 0x12a   :  { %693 = vmatprep.subr.bf16.mxu1 %v848_v0  ;;  %v700_v7 = vpack.c.bf16 %v362_v6, %v361_v1 }
 0x12d   :  { %695 = vmatpush3.bf16.msra.mxu1 %v694_v2 }
 0x12e   :  { %696 = vmatprep.subr.bf16.mxu1 %v848_v0 }
 0x131   :  { %698 = vmatpush3.bf16.msra.mxu1 %v697_v5 }
 0x132   :  { %699 = vmatprep.subr.bf16.mxu1 %v848_v0 }
 0x135   :  { %701 = vmatpush3.bf16.msra.mxu1 %v700_v7 }
 0x136   :  { %702 = vmatprep.subr.bf16.mxu1 %v848_v0 }
 0x139   :  { %704 = vmatpush3.bf16.msra.mxu1 %v703_v10 }
 0x13a   :  { %705 = vmatprep.subr.bf16.mxu1 %v848_v0 }
 0x13d   :  { %707 = vmatpush3.bf16.msra.mxu1 %v706_v13 }
 0x13e   :  { %708 = vmatprep.subr.bf16.mxu1 %v848_v0 }
 0x141   :  { %710 = vmatpush3.bf16.msra.mxu1 %v709_v16 }
 0x142   :  { %711 = vmatprep.subr.bf16.mxu1 %v848_v0 }
 0x145   :  { %713 = vmatpush3.bf16.msra.mxu1 %v712_v24 }
 0x1fb   :  { %v254_v18 = vpop.f32.mrb[0].mxu1 }
 0x1fc   :  { %v255_v19 = vadd.f32 %v469_v17, %v254_v18  ;;  %v568_v20 = vpop.f32.mrb[1].mxu1 }
 0x1fe   :  { %v258_v21 = vmax.f32 %v255_v19, 0.0 }
 0x200   :  { %602 = vmatmul.mubr.f32.vlgmr.msra.gmra.mrb[2].mxu0 %v258_v21 }
 0x2d3   :  { %v350_v26 = vpop.f32.mrb[2].mxu0 }
 0x2d4   :  { %v351_v27 = vadd.f32 %v471_v25, %v350_v26  ;;  %v603_v0 = vpop.f32.mrb[3].mxu0 }
 0x2d6   :  { %v354_v28 = vmax.f32 %v351_v27, 0.0 }
 0x2d8   :  { %637 = vmatmul.mubr.f32.vlgmr.msra.gmra.mrb[2].mxu1 %v354_v28 }
 0x3ab   :  { %v444_v30 = vpop.f32.mrb[2].mxu1 }
 0x3ac   :  { %v445_v31 = vadd.f32 %v472_v29, %v444_v30  ;;  %v638_v32 = vpop.f32.mrb[3].mxu1 }
 0x3ae   :  { %v448_v33 = vmax.f32 %v445_v31, 0.0 }
 0x3b0   :  { %449 = vst [vmem:[#allocation10] sm:$0xff] %v448_v33 }
 0x3b1   :  { %823 = shalt.err (!%p820_p8)
}
 0x3b2   :  { %s824_s13 = scalar_lea.hbm %s1013_s7, 128 }
 0x3b3   :  { %p825_p9 = scmp.ne.s32.totalorder %s1013_s7, %s824_s13  ;;  %p828_p10 = scmp.lt.u32.totalorder %s824_s13, %s1013_s7 }
 0x3b5   :  { %p830_p11 = pnand %p828_p10, %p825_p9 }
 0x3b7   :  { %833 = shalt.err (!%p830_p11)
}
 0x3b8   :  { %459 = dma.vmem_to_hbm [thread:$0]  %s457_s8, 128, %s1013_s7, [#allocation4]  }
 0x3b9   :  { %840 = dma.done.wait [#allocation4], 128  }
 0x3ba   :  { %841 = vsyncadd [#allocation4], 4294967168 }
 0x3bb   :  { %463 = vsyncpa [#allocation3], 1 }
 0x3bc   :  { %464 = vsyncpa [#allocation6], 1 }
 0x3bd   :  { %465 = vsyncpa [#allocation9], 1 }
 0x3be   :  { %466 = vsyncpa [#allocation4], 1 }

</bundles_post_ra>
